<compile_context>
chip_gen: v6e
topology: v6e:2x2x1
jax: 0.10.0
libtpu: 0.0.40
codegen_flags: <defaults>
</compile_context>

<pallas_src>
import functools

import jax
import jax.numpy as jnp
from jax.experimental import pallas as pl
from jax.experimental.pallas import tpu as pltpu

_LANE = 128      # vreg lane width
_SUBLANE = 8     # vreg sublane count (f32)


def _linear_kernel(x_ref, w_ref, b_ref, o_ref):
    # y = x @ W + b : MXU matmul with f32 accumulation, f32 VPU bias-add epilogue.
    acc = jnp.dot(x_ref[...], w_ref[...], preferred_element_type=jnp.float32)
    o_ref[...] = (acc + b_ref[...]).astype(o_ref.dtype)


def _round_up(x, m):
    return ((x + m - 1) // m) * m


@functools.partial(jax.jit, static_argnames=("block_m",))
def classifier_forward(x, weight, bias, *, block_m=512):
    """Forward of nn.Linear(dim, n_way).

    x:      [batch, dim]   float32
    weight: [dim, n_way]   float32   (PyTorch weight.T)
    bias:   [n_way]        float32
    returns [batch, n_way] float32
    """
    batch, dim = x.shape
    n_way = weight.shape[1]

    # ---- Pad class dim to a multiple of 128 lanes (lane-dense output stores). ----
    n_pad = _round_up(n_way, _LANE)
    w_p = jnp.pad(weight, ((0, 0), (0, n_pad - n_way)))            # zero-pad columns
    b_p = jnp.pad(bias, (0, n_pad - n_way)).reshape(1, n_pad)      # zero-pad bias

    # ---- Pad batch to a sublane multiple and pick the batch tile. ----
    if batch <= block_m:
        tm = _round_up(batch, _SUBLANE)
        m_pad = tm
    else:
        tm = block_m
        m_pad = _round_up(batch, tm)
    x_p = jnp.pad(x, ((0, m_pad - batch), (0, 0)))

    out_shape = jax.ShapeDtypeStruct((m_pad, n_pad), x.dtype)

    if m_pad == tm:
        # Single-tile case: no grid at all -> no per-step pipeline overhead.
        out = pl.pallas_call(
            _linear_kernel,
            out_shape=out_shape,
            in_specs=[
                pl.BlockSpec(memory_space=pltpu.MemorySpace.VMEM),
                pl.BlockSpec(memory_space=pltpu.MemorySpace.VMEM),
                pl.BlockSpec(memory_space=pltpu.MemorySpace.VMEM),
            ],
            out_specs=pl.BlockSpec(memory_space=pltpu.MemorySpace.VMEM),
        )(x_p, w_p, b_p)
    else:
        # Large batch: tile only the batch axis. Weight/bias block indices are constant
        # across the grid, so they stay resident in VMEM (no re-DMA per step).
        grid = (m_pad // tm,)
        out = pl.pallas_call(
            _linear_kernel,
            out_shape=out_shape,
            grid_spec=pltpu.PrefetchScalarGridSpec(
                num_scalar_prefetch=0,
                grid=grid,
                in_specs=[
                    pl.BlockSpec((tm, dim), lambda i: (i, 0)),
                    pl.BlockSpec((dim, n_pad), lambda i: (0, 0)),
                    pl.BlockSpec((1, n_pad), lambda i: (0, 0)),
                ],
                out_specs=pl.BlockSpec((tm, n_pad), lambda i: (i, 0)),
            ),
            compiler_params=pltpu.CompilerParams(
                dimension_semantics=("parallel",),  # shards batch tiles across TCs on v7x
            ),
        )(x_p, w_p, b_p)

    # Slice padding back off (padded rows/cols were zero-filled).
    return out[:batch, :n_way]


if __name__ == "__main__":
    key = jax.random.PRNGKey(0)
    kx, kw, kb, kx2 = jax.random.split(key, 4)

    # ---- Small shapes consistent with the module: dim=32 features, n_way=5 classes ----
    batch, dim, n_way = 8, 32, 5
    x = jax.random.normal(kx, (batch, dim), dtype=jnp.float32)
    bound = 1.0 / jnp.sqrt(jnp.float32(dim))
    weight = jax.random.uniform(kw, (dim, n_way), minval=-bound, maxval=bound,
                                dtype=jnp.float32)
    bias = jax.random.uniform(kb, (n_way,), minval=-bound, maxval=bound,
                              dtype=jnp.float32)

    out = jax.block_until_ready(classifier_forward(x, weight, bias))
    ref = x @ weight + bias
    assert out.shape == (batch, n_way)
    assert jnp.allclose(out, ref, atol=1e-5, rtol=1e-5)

    # ---- Also exercise the batch-tiled grid path (ragged batch, multiple tiles) ----
    big_batch = 1037
    x_big = jax.random.normal(kx2, (big_batch, dim), dtype=jnp.float32)
    out_big = jax.block_until_ready(classifier_forward(x_big, weight, bias))
    ref_big = x_big @ weight + bias
    assert out_big.shape == (big_batch, n_way)
    assert jnp.allclose(out_big, ref_big, atol=1e-5, rtol=1e-5)

    print("KERNEL_OK")
</pallas_src>

<mosaic_0001>
module attributes {stable_mosaic.version = 11 : i64} {
  func.func @_linear_kernel(%arg0: memref<8x32xf32, #tpu.memory_space<vmem>>, %arg1: memref<32x128xf32, #tpu.memory_space<vmem>>, %arg2: memref<1x128xf32, #tpu.memory_space<vmem>>, %arg3: memref<8x128xf32, #tpu.memory_space<vmem>>) attributes {dimension_semantics = [], scalar_prefetch = 0 : i64, scratch_operands = 0 : i64, tpu.core_type = #tpu.core_type<tc>} {
    %c0 = arith.constant 0 : index
    %c0_0 = arith.constant 0 : index
    %0 = vector.load %arg0[%c0, %c0_0] : memref<8x32xf32, #tpu.memory_space<vmem>>, vector<8x32xf32>
    %c0_1 = arith.constant 0 : index
    %c0_2 = arith.constant 0 : index
    %1 = vector.load %arg1[%c0_1, %c0_2] : memref<32x128xf32, #tpu.memory_space<vmem>>, vector<32x128xf32>
    %cst = arith.constant dense<0.000000e+00> : vector<8x128xf32>
    %2 = tpu.matmul %0, %1, %cst {dimension_numbers = #tpu.dot_dimension_numbers<[1], [0], [0], [1], [0, 0, 1, 1], [], []>} : vector<8x32xf32>, vector<32x128xf32>, vector<8x128xf32> -> vector<8x128xf32>
    %c0_3 = arith.constant 0 : index
    %c0_4 = arith.constant 0 : index
    %3 = vector.load %arg2[%c0_3, %c0_4] : memref<1x128xf32, #tpu.memory_space<vmem>>, vector<1x128xf32>
    %4 = vector.broadcast %3 : vector<1x128xf32> to vector<8x128xf32>
    %5 = arith.addf %2, %4 : vector<8x128xf32>
    %c0_5 = arith.constant 0 : index
    %c0_6 = arith.constant 0 : index
    %6 = vector.load %arg3[%c0_5, %c0_6] : memref<8x128xf32, #tpu.memory_space<vmem>>, vector<8x128xf32>
    tpu.vector_store %arg3[%c0_5, %c0_6], %5 {strides = array<i32>} : memref<8x128xf32, #tpu.memory_space<vmem>>, vector<8x128xf32>,
    return
  }
}

</mosaic_0001>

<bundles_post_ra>
// kernel: classifier_forward.1
= control target key start
LH: loop header
LB: loop body
LE: loop exit
PB: predicated region body
PF: predicated region fallthrough
CT: control target
= control target key end

     0   :  { %v159_v1 = vmov 0.0   ;;  %vm160_vm0 = vmmov 0   ;;  %s203_s0 = inlined_call_operand.vmem [shape: f32[8,32], index: 0, kind: input, shape index: {}]   ;;  %s204_s1 = inlined_call_operand.vmem [shape: f32[32,128], index: 1, kind: input, shape index: {}]   ;;  %s205_s2 = inlined_call_operand.vmem [shape: f32[1,128], index: 2, kind: input, shape index: {}]   ;;  %s206_s3 = inlined_call_operand.hbm [shape: f32[8,128], index: 3, kind: output, shape index: {}]  }
   0x1   :  { %v19_v0 = vld [vmem:[%s204_s1 + $0x18] sm:$0xff]  ;;  %123 = vmatprep.subr.mxu0 %v159_v1  ;;  %v18_v2 = vld [vmem:[%s204_s1 + $0x10] sm:$0xff]  ;;  %131 = vmatprep.mubr.msk.f32.mxu0 %vm160_vm0, %v159_v1 }
   0x2   :  { %124 = vmatpush3.msra.mxu0 %v19_v0 }
   0x3   :  { %8 = vsyncpa [#allocation3], 0  ;;  %125 = vmatprep.subr.mxu0 %v159_v1  ;;  %v17_v3 = vld [vmem:[%s204_s1 + $0x8] sm:$0xff]  ;;  %v16_v4 = vld [vmem:[%s204_s1] sm:$0xff]  ;;  %vm27_vm1 = vcmask 261120   ;;  %s161_s24 = smov [#allocation2]  }
   0x4   :  { %126 = vmatpush3.msra.mxu0 %v18_v2  ;;  %v15_v5 = vld [vmem:[%s203_s0] sm:$0xff]  ;;  %s108_s25 = sshll.u32 %s161_s24, 4  ;;  %s109_s25 = int_to_ptr.vmem [resolvable:$true] %s108_s25 }
   0x5   :  { %127 = vmatprep.subr.mxu0 %v159_v1  ;;  %v116_v6 = vld [vmem:[%s205_s2] ss:$0 sm:$0xff]  ;;  %s137_s1 = scalar_lea.vmem %s109_s25, 128  ;;  %p142_p1 = scmp.lt.s32.totalorder %s109_s25, %s109_s25 }
   0x6   :  { %128 = vmatpush3.msra.mxu0 %v17_v3  ;;  %p138_p0 = scmp.ne.s32.totalorder %s109_s25, %s137_s1  ;;  %p143_p2 = scmp.lt.s32.totalorder %s137_s1, %s137_s1 }
   0x7   :  { %129 = vmatprep.subr.mxu0 %v159_v1 }
   0x8   :  { %130 = vmatpush3.msra.mxu0 %v16_v4  ;;  %p144_p3 = por %p143_p2, %p142_p1 }
   0x9   :  { %132 = vmatmul.mubr.msk.f32.vlgmr.msra.gmra.mxu0 %vm27_vm1, %v15_v5 }
   0xa   :  { %p145_p4 = pnand %p144_p3, %p138_p0 }
  0xc9   :  { %v97_v7 = vpop.f32.mrf.mxu0 }
  0xca   :  { %v98_v8 = vadd.f32 %v116_v6, %v97_v7 }
  0xcb   :  { %v133_v9 = vpop.f32.mrf.mxu0 }
  0xcc   :  { %101 = vst [vmem:[#allocation2] sm:$0xff] %v98_v8 }
  0xcd   :  { %148 = shalt.err (!%p145_p4)
}
  0xce   :  { %111 = dma.vmem_to_hbm [thread:$0]  %s109_s25, 128, %s206_s3, [#allocation3]  }
  0xcf   :  { %157 = dma.done.wait [#allocation3], 128  }
  0xd0   :  { %158 = vsyncadd [#allocation3], 4294967168 }
  0xd1   :  { %115 = vsyncpa [#allocation3], 1 }

</bundles_post_ra>
